<compile_context>
chip_gen: v7x
topology: tpu7x:2x2x1
jax: 0.10.0
libtpu: 0.0.40
codegen_flags: <defaults>
</compile_context>

<pallas_src>
import jax
import jax.numpy as jnp
from jax.experimental import pallas as pl
from jax.experimental.pallas import tpu as pltpu


def _round_up(v, m):
    return -(-v // m) * m


def _round_down(v, m):
    return (v // m) * m


def reverse_kernel(x_ref, w_ref, b_ref, o_ref):
    # x_ref: (TB, H) VMEM    w_ref: (1, H) VMEM (lane-dense weight row)
    # b_ref: (1,)    SMEM    o_ref: (1, 1, TB) VMEM (lane-dense output row)
    prod = x_ref[...] * w_ref[...]                 # VPU, broadcast over rows
    z = jnp.sum(prod, axis=-1) + b_ref[0]          # XLU lane-reduce -> (TB,)
    # sigmoid(-z) == 1 / (1 + exp(z)); exp overflow -> inf -> 0 == sigmoid(-inf)
    s = 1.0 / (1.0 + jnp.exp(z))                   # EUP exp + exact reciprocal
    o_ref[...] = s.reshape(o_ref.shape)            # (TB,) -> (1, 1, TB)


def reverse_model(x, w, b, *, block_b=None,
                  target_step_bytes=2 << 20, vmem_budget_bytes=24 << 20):
    """sigmoid(-(x @ w + b)).squeeze(-1)

    x: (B, H) float32
    w: (H, 1) float32   (transposed nn.Linear weight)
    b: (1, 1) float32
    returns: (B,) float32
    """
    B, H = x.shape
    x = x.astype(jnp.float32)
    w_row = w.reshape(1, H).astype(jnp.float32)    # lane-dense weight row
    b_smem = b.reshape(1).astype(jnp.float32)      # scalar bias for SMEM

    hbm_row_bytes = H * 4                          # bytes actually DMA'd per row
    vmem_row_bytes = _round_up(H, 128) * 4         # lane-padded VMEM bytes per row

    if block_b is None:
        # Largest TB whose two double-buffered x tiles fit the VMEM budget.
        tb_vmem_max = max(8, _round_down(vmem_budget_bytes // (2 * vmem_row_bytes), 8))
        # Stream >= ~2 MiB of HBM payload per grid step (>= 2048 rows).
        tb = max(2048, target_step_bytes // hbm_row_bytes)
        # v7x megacore: keep >= 2 grid steps when there is enough work to split.
        if B > 2 * 128:
            tb = min(tb, _round_up(pl.cdiv(B, 2), 128))
        tb = _round_up(tb, 128)                    # lane-dense (unmasked) stores
        tb = min(tb, tb_vmem_max)
        if B <= tb:
            tb = B                                 # single exact block, no padding
    else:
        tb = min(block_b, B)                       # explicit override (tests)

    num_tiles = pl.cdiv(B, tb)

    out = pl.pallas_call(
        reverse_kernel,
        out_shape=jax.ShapeDtypeStruct((num_tiles, 1, tb), jnp.float32),
        grid=(num_tiles,),
        in_specs=[
            # x: pipelined (TB, H) tiles over the batch axis; the last block
            # may be partial (no wrapper-side pad of x).
            pl.BlockSpec((tb, H), lambda i: (i, 0)),
            # w: (1, H) row, resident (same block every step).
            pl.BlockSpec((1, H), lambda i: (0, 0)),
            # bias: whole (1,) array in SMEM, single scalar load.
            pl.BlockSpec(memory_space=pltpu.MemorySpace.SMEM),
        ],
        out_specs=pl.BlockSpec((1, 1, tb), lambda i: (i, 0, 0)),
        compiler_params=pltpu.CompilerParams(
            dimension_semantics=("parallel",),
            vmem_limit_bytes=32 << 20,
        ),
    )(x, w_row, b_smem)

    # torch .squeeze(-1): lane-dense slab -> (B,); garbage tail lanes from the
    # partial last block are dropped here.
    return out.reshape(num_tiles * tb)[:B]


if __name__ == "__main__":
    H = 32
    key = jax.random.PRNGKey(0)
    kx, kw, kb, kx2 = jax.random.split(key, 4)

    # deterministic "Linear(H, 1)" parameters
    w = jax.random.normal(kw, (H, 1), dtype=jnp.float32) * (1.0 / jnp.sqrt(H))
    b = jax.random.normal(kb, (1, 1), dtype=jnp.float32) * 0.1

    def ref(xv):
        return jax.nn.sigmoid(-(xv @ w + b))[:, 0]

    # Small shape consistent with the module (batch=8, hidden=32): exact
    # single-block path.
    B = 8
    x = jax.random.normal(kx, (B, H), dtype=jnp.float32)
    y = reverse_model(x, w, b)
    jax.block_until_ready(y)
    assert y.shape == (B,)
    assert jnp.allclose(y, ref(x), atol=1e-5, rtol=1e-5)

    # Multi-tile path with a partial last block (exercises the no-pad design).
    B2 = 333
    x2 = jax.random.normal(kx2, (B2, H), dtype=jnp.float32)
    y2 = reverse_model(x2, w, b, block_b=128)
    jax.block_until_ready(y2)
    assert y2.shape == (B2,)
    assert jnp.allclose(y2, ref(x2), atol=1e-5, rtol=1e-5)

    print("KERNEL_OK")
</pallas_src>

<mosaic_0001>
module attributes {stable_mosaic.version = 11 : i64} {
  func.func @reverse_kernel(%arg0: i32, %arg1: memref<8x32xf32, #tpu.memory_space<vmem>>, %arg2: memref<1x32xf32, #tpu.memory_space<vmem>>, %arg3: memref<1xf32, #tpu.memory_space<smem>>, %arg4: memref<1x1x8xf32, #tpu.memory_space<vmem>>) attributes {dimension_semantics = [#tpu.dimension_semantics<parallel>], iteration_bounds = array<i64: 1>, scalar_prefetch = 0 : i64, scratch_operands = 0 : i64, tpu.core_type = #tpu.core_type<tc>, window_params = [{transform_indices = @transform_0, window_bounds = array<i64: 8, 32>}, {pipeline_mode = #tpu.pipeline_mode<synchronous>, transform_indices = @transform_1, window_bounds = array<i64: 1, 32>}, {transform_indices = @transform_2, window_bounds = array<i64: 1>}, {transform_indices = @transform_3, window_bounds = array<i64: 1, 1, 8>}]} {
    %c0 = arith.constant 0 : index
    %c0_0 = arith.constant 0 : index
    %0 = vector.load %arg1[%c0, %c0_0] : memref<8x32xf32, #tpu.memory_space<vmem>>, vector<8x32xf32>
    %c0_1 = arith.constant 0 : index
    %c0_2 = arith.constant 0 : index
    %1 = vector.load %arg2[%c0_1, %c0_2] : memref<1x32xf32, #tpu.memory_space<vmem>>, vector<1x32xf32>
    %2 = vector.broadcast %1 : vector<1x32xf32> to vector<8x32xf32>
    %3 = arith.mulf %0, %2 : vector<8x32xf32>
    %cst = arith.constant dense<0.000000e+00> : vector<8xf32>
    %4 = vector.multi_reduction <add>, %3, %cst [1] : vector<8x32xf32> to vector<8xf32>
    %c0_3 = arith.constant 0 : index
    %5 = memref.load %arg3[%c0_3] : memref<1xf32, #tpu.memory_space<smem>>
    %6 = vector.broadcast %5 : f32 to vector<8xf32>
    %7 = arith.addf %4, %6 : vector<8xf32>
    %8 = math.exp %7 : vector<8xf32>
    %cst_4 = arith.constant 1.000000e+00 : f32
    %9 = vector.broadcast %cst_4 : f32 to vector<8xf32>
    %10 = arith.addf %9, %8 : vector<8xf32>
    %cst_5 = arith.constant 1.000000e+00 : f32
    %11 = vector.broadcast %cst_5 : f32 to vector<8xf32>
    %12 = arith.divf %11, %10 : vector<8xf32>
    %13 = vector.shape_cast %12 : vector<8xf32> to vector<1x1x8xf32>
    %c0_6 = arith.constant 0 : index
    %c0_7 = arith.constant 0 : index
    %c0_8 = arith.constant 0 : index
    %14 = vector.load %arg4[%c0_6, %c0_7, %c0_8] : memref<1x1x8xf32, #tpu.memory_space<vmem>>, vector<1x1x8xf32>
    tpu.vector_store %arg4[%c0_6, %c0_7, %c0_8], %13 {strides = array<i32>} : memref<1x1x8xf32, #tpu.memory_space<vmem>>, vector<1x1x8xf32>,
    return
  }
  func.func @transform_0(%arg0: i32) -> (i32, i32) {
    %c0_i32 = arith.constant 0 : i32
    %c0_i32_0 = arith.constant 0 : i32
    return %arg0, %c0_i32 : i32, i32
  }
  func.func @transform_1(%arg0: i32) -> (i32, i32) {
    %c0_i32 = arith.constant 0 : i32
    %c0_i32_0 = arith.constant 0 : i32
    %c0_i32_1 = arith.constant 0 : i32
    return %c0_i32, %c0_i32_0 : i32, i32
  }
  func.func @transform_2(%arg0: i32) -> i32 {
    %c0_i32 = arith.constant 0 : i32
    %c0_i32_0 = arith.constant 0 : i32
    return %c0_i32 : i32
  }
  func.func @transform_3(%arg0: i32) -> (i32, i32, i32) {
    %c0_i32 = arith.constant 0 : i32
    %c0_i32_0 = arith.constant 0 : i32
    %c0_i32_1 = arith.constant 0 : i32
    return %arg0, %c0_i32, %c0_i32_0 : i32, i32, i32
  }
}

</mosaic_0001>

<bundles_post_ra>
// kernel: tpu_custom_call.1
= control target key start
LH: loop header
LB: loop body
LE: loop exit
PB: predicated region body
PF: predicated region fallthrough
CT: control target
= control target key end

     0   :  { %9 = vsyncpa [#allocation4], 0  ;;  %s181_s0 = inlined_call_operand.hbm [shape: f32[8,32], index: 0, kind: input, shape index: {}]   ;;  %s182_s1 = inlined_call_operand.vmem [shape: f32[1,32], index: 1, kind: input, shape index: {}]   ;;  %s183_s2 = inlined_call_operand.<no memory space> [shape: f32[1], index: 2, kind: input, shape index: {}]   ;;  %s184_s3 = inlined_call_operand.hbm [shape: f32[1,1,8], index: 3, kind: output, shape index: {}]  }
   0x1   :  { %10 = vsyncpa [#allocation5], 0  ;;  %s129_s12 = smov [#allocation3]   ;;  %s81_s16 = scalar_lea.hbm %s181_s0, 128 }
   0x2   :  { %s17_s13 = sshll.u32 %s129_s12, 4  ;;  %p82_p0 = scmp.ne.s32.totalorder %s181_s0, %s81_s16  ;;  %s18_s13 = int_to_ptr.vmem [resolvable:$true] %s17_s13 }
   0x3   :  { %p85_p1 = scmp.lt.u32.totalorder %s81_s16, %s181_s0 }
   0x5   :  { %p87_p2 = pnand %p85_p1, %p82_p0 }
   0x7   :  { %90 = shalt.err (!%p87_p2)
}
   0x8   :  { %s91_s21 = scalar_lea.vmem %s18_s13, 128  ;;  %p96_p4 = scmp.lt.s32.totalorder %s18_s13, %s18_s13 }
   0x9   :  { %p92_p3 = scmp.ne.s32.totalorder %s18_s13, %s91_s21  ;;  %p97_p5 = scmp.lt.s32.totalorder %s91_s21, %s91_s21 }
   0xb   :  { %p98_p6 = por %p97_p5, %p96_p4 }
   0xd   :  { %p99_p7 = pnand %p98_p6, %p92_p3 }
   0xf   :  { %102 = shalt.err (!%p99_p7)
}
  0x10   :  { %20 = dma.hbm_to_vmem [thread:$0]  %s181_s0, 128, %s18_s13, [#allocation4]  }
  0x11   :  { %125 = dma.done.wait [#allocation4], 128  }
  0x12   :  { %126 = vsyncadd [#allocation4], 4294967168  ;;  %v28_v0 = vld [vmem:[#allocation3] sm:$0xff]  ;;  %vm37_vm0 = vcmask 261120   ;;  %v42_v4 = vstv %s183_s2  ;;  %v50_v10 = vlaneseq  ;;  %s130_s0 = smov [#allocation6]   ;;  %vm57_vm1 = vcmask 57344  }
  0x13   :  { %v74_v1 = vld [vmem:[%s182_s1] ss:$0 sm:$0xff]  ;;  %s65_s1 = sshll.u32 %s130_s0, 4  ;;  %s66_s1 = int_to_ptr.vmem [resolvable:$true] %s65_s1 }
  0x14   :  { %v36_v2 = vmul.f32 %v74_v1, %v28_v0  ;;  %v51_v11 = vand.u32 127, %v50_v10  ;;  %v53_v12 = vshrl.u32 %v50_v10, 7  ;;  %s103_s28 = scalar_lea.vmem %s66_s1, 16  ;;  %s107_s2 = scalar_lea.vmem %s66_s1, 32 }
  0x15   :  { %p104_p8 = scmp.ne.s32.totalorder %s66_s1, %s103_s28  ;;  %p108_p9 = scmp.lt.s32.totalorder %s66_s1, %s66_s1 }
  0x16   :  { %v38_v3 = vsel %vm37_vm0, %v36_v2, 0.0  ;;  %v54_v13 = vsub.s32 %v51_v11, %v53_v12  ;;  %p109_p10 = scmp.lt.s32.totalorder %s107_s2, %s103_s28 }
  0x17   :  { %39 = vadd.xlane.f32.xlu0 %v38_v3 }
  0x18   :  { %p110_p11 = por %p109_p10, %p108_p9 }
  0x1a   :  { %p111_p12 = pnand %p110_p11, %p104_p8 }
  0xa4   :  { %v40_v5 = vpop.xlane.xlu0 %39 }
  0xa5   :  { %v43_v6 = vadd.f32 %v42_v4, %v40_v5 }
  0xa7   :  { %v44_v7 = vmul.f32 1.442695, %v43_v6 }
  0xa9   :  { %77 = vpow2.f32 %v44_v7 }
  0xb3   :  { %v78_v8 = vpop.eup %77 }
  0xb4   :  { %v46_v9 = vadd.f32 1.0, %v78_v8 }
  0xb6   :  { %79 = vrcp.f32 %v46_v9 }
  0xc0   :  { %v80_v14 = vpop.eup %79 }
  0xc1   :  { %v55_v15 = vrot.slane %v80_v14, %v54_v13 }
  0xc3   :  { %58 = vst.msk [vmem:[#allocation6] sm:$0x1] %vm57_vm1, %v55_v15 }
  0xc4   :  { %114 = shalt.err (!%p111_p12)
}
  0xc5   :  { %s115_s4 = scalar_lea.hbm %s184_s3, 16 }
  0xc6   :  { %p116_p13 = scmp.ne.s32.totalorder %s184_s3, %s115_s4  ;;  %p119_p0 = scmp.lt.u32.totalorder %s115_s4, %s184_s3 }
  0xc8   :  { %p121_p1 = pnand %p119_p0, %p116_p13 }
  0xca   :  { %124 = shalt.err (!%p121_p1)
}
  0xcb   :  { %68 = dma.vmem_to_hbm [thread:$0]  %s66_s1, 16, %s184_s3, [#allocation5]  }
  0xcc   :  { %127 = dma.done.wait [#allocation5], 16  }
  0xcd   :  { %128 = vsyncadd [#allocation5], 4294967280 }
  0xce   :  { %72 = vsyncpa [#allocation4], 1 }
  0xcf   :  { %73 = vsyncpa [#allocation5], 1 }

</bundles_post_ra>
